<compile_context>
chip_gen: v7x
topology: tpu7x:2x2x1
jax: 0.10.0
libtpu: 0.0.40
codegen_flags: <defaults>
</compile_context>

<pallas_src>
import functools

import jax
import jax.numpy as jnp
from jax.experimental import pallas as pl
from jax.experimental.pallas import tpu as pltpu


_LANE = 512            # minor dim of the flattened slab (multiple of 128)
_SUBLANE = 8
_MAX_TILE_ROWS = 1024  # 1024 * 512 * 4 B = 2 MiB per input block
_NUM_CORES = 2         # leading "parallel" axis (v7x 2-TC; harmless on 1-TC)


def _round_up(x, m):
    return ((x + m - 1) // m) * m


def _sq_diff_partial_kernel(pred_ref, tgt_ref, out_ref):
    """Accumulate a per-core (8, LANE) partial sum of (pred - tgt)^2."""
    i = pl.program_id(1)  # reduction ("arbitrary") axis

    @pl.when(i == 0)
    def _init():
        out_ref[...] = jnp.zeros_like(out_ref)

    d = pred_ref[...].astype(jnp.float32) - tgt_ref[...].astype(jnp.float32)
    sq = d * d
    # (tile_rows, LANE) -> (tile_rows//8, 8, LANE): pure sublane regrouping,
    # then a VPU elementwise accumulate; no per-step cross-lane reduction.
    out_ref[...] += jnp.sum(sq.reshape(-1, _SUBLANE, sq.shape[-1]), axis=0)


@functools.partial(jax.jit, static_argnames=("use_target_weight",))
def points_mse_loss(output, target, use_target_weight=False):
    """JAX/Pallas equivalent of pointsMSELoss(use_target_weight).forward."""
    assert output.shape == target.shape
    b, p = output.shape[0], output.shape[1]
    hw = 1
    for s in output.shape[2:]:
        hw *= s
    n = b * p * hw

    # Lane-dense slab layout. Both inputs padded identically with zeros so the
    # padded region contributes exactly 0 to sum((pred - tgt)^2).
    rows = _round_up((n + _LANE - 1) // _LANE, _SUBLANE)
    tile_rows = min(rows, _MAX_TILE_ROWS)          # multiple of 8 by construction
    rows = _round_up(rows, tile_rows * _NUM_CORES)
    steps = rows // (tile_rows * _NUM_CORES)
    padded = rows * _LANE

    def _to_slab(x):
        flat = x.reshape(-1)
        flat = jnp.pad(flat, (0, padded - n))
        return flat.reshape(rows, _LANE)

    pred = _to_slab(output)
    tgt = _to_slab(target)

    in_map = lambda c, i: (c * steps + i, 0)

    partials = pl.pallas_call(
        _sq_diff_partial_kernel,
        out_shape=jax.ShapeDtypeStruct((_NUM_CORES, _SUBLANE, _LANE), jnp.float32),
        grid_spec=pltpu.PrefetchScalarGridSpec(
            num_scalar_prefetch=0,
            grid=(_NUM_CORES, steps),
            in_specs=[
                pl.BlockSpec((tile_rows, _LANE), in_map),
                pl.BlockSpec((tile_rows, _LANE), in_map),
            ],
            out_specs=pl.BlockSpec((None, _SUBLANE, _LANE), lambda c, i: (c, 0, 0)),
        ),
        compiler_params=pltpu.CompilerParams(
            dimension_semantics=("parallel", "arbitrary"),
            vmem_limit_bytes=32 * 1024 * 1024,
        ),
        cost_estimate=pl.CostEstimate(
            flops=3 * padded,
            transcendentals=0,
            bytes_accessed=2 * padded * output.dtype.itemsize
            + _NUM_CORES * _SUBLANE * _LANE * 4,
        ),
    )(pred, tgt)

    total = jnp.sum(partials)  # single final cross-lane reduce, in the wrapper
    # 0.5 * (sum over points of per-point mean) / num_points
    loss = 0.5 * total / jnp.float32(b * hw * p)
    return loss


def _reference(output, target):
    b, p = output.shape[0], output.shape[1]
    pred = output.reshape(b, p, -1).astype(jnp.float32)
    gt = target.reshape(b, p, -1).astype(jnp.float32)
    loss = 0.0
    for idx in range(p):
        loss += 0.5 * jnp.mean((pred[:, idx] - gt[:, idx]) ** 2)
    return loss / p


if __name__ == "__main__":
    key = jax.random.PRNGKey(0)
    k1, k2 = jax.random.split(key)
    B, P, H, W = 2, 4, 16, 16  # batch, num_points, heatmap H, W
    output = jax.random.normal(k1, (B, P, H, W), dtype=jnp.float32)
    target = jax.random.normal(k2, (B, P, H, W), dtype=jnp.float32)

    loss = points_mse_loss(output, target, use_target_weight=False)
    loss = jax.block_until_ready(loss)

    ref = _reference(output, target)
    assert jnp.allclose(loss, ref, rtol=1e-5, atol=1e-6), (loss, ref)
    print("KERNEL_OK")
</pallas_src>

<mosaic_0001>
module attributes {stable_mosaic.version = 11 : i64} {
  func.func @_sq_diff_partial_kernel(%arg0: i32, %arg1: i32, %arg2: memref<8x512xf32, #tpu.memory_space<vmem>>, %arg3: memref<8x512xf32, #tpu.memory_space<vmem>>, %arg4: memref<1x8x512xf32, #tpu.memory_space<vmem>>) attributes {dimension_semantics = [#tpu.dimension_semantics<parallel>, #tpu.dimension_semantics<arbitrary>], iteration_bounds = array<i64: 2, 1>, scalar_prefetch = 0 : i64, scratch_operands = 0 : i64, tpu.core_type = #tpu.core_type<tc>, window_params = [{transform_indices = @transform_0, window_bounds = array<i64: 8, 512>}, {transform_indices = @transform_1, window_bounds = array<i64: 8, 512>}, {transform_indices = @transform_2, window_bounds = array<i64: 1, 8, 512>}]} {
    %c0_i32 = arith.constant 0 : i32
    %0 = arith.cmpi eq, %arg1, %c0_i32 : i32
    %1 = arith.extui %0 : i1 to i32
    %c0_i32_0 = arith.constant 0 : i32
    %2 = arith.cmpi ne, %1, %c0_i32_0 : i32
    scf.if %2 {
      %cst_10 = arith.constant 0.000000e+00 : f32
      %15 = vector.broadcast %cst_10 : f32 to vector<8x512xf32>
      %c0_11 = arith.constant 0 : index
      %c0_12 = arith.constant 0 : index
      %c0_13 = arith.constant 0 : index
      %16 = vector.load %arg4[%c0_11, %c0_12, %c0_13] : memref<1x8x512xf32, #tpu.memory_space<vmem>>, vector<1x8x512xf32>
      %17 = vector.shape_cast %16 : vector<1x8x512xf32> to vector<8x512xf32>
      %18 = vector.shape_cast %15 : vector<8x512xf32> to vector<1x8x512xf32>
      tpu.vector_store %arg4[%c0_11, %c0_12, %c0_13], %18 {strides = array<i32>} : memref<1x8x512xf32, #tpu.memory_space<vmem>>, vector<1x8x512xf32>,
    } else {
    }
    %c0 = arith.constant 0 : index
    %c0_1 = arith.constant 0 : index
    %3 = vector.load %arg2[%c0, %c0_1] : memref<8x512xf32, #tpu.memory_space<vmem>>, vector<8x512xf32>
    %c0_2 = arith.constant 0 : index
    %c0_3 = arith.constant 0 : index
    %4 = vector.load %arg3[%c0_2, %c0_3] : memref<8x512xf32, #tpu.memory_space<vmem>>, vector<8x512xf32>
    %5 = arith.subf %3, %4 : vector<8x512xf32>
    %6 = arith.mulf %5, %5 : vector<8x512xf32>
    %c0_4 = arith.constant 0 : index
    %c0_5 = arith.constant 0 : index
    %c0_6 = arith.constant 0 : index
    %7 = vector.load %arg4[%c0_4, %c0_5, %c0_6] : memref<1x8x512xf32, #tpu.memory_space<vmem>>, vector<1x8x512xf32>
    %8 = vector.shape_cast %7 : vector<1x8x512xf32> to vector<8x512xf32>
    %9 = vector.shape_cast %6 : vector<8x512xf32> to vector<1x8x512xf32>
    %cst = arith.constant dense<0.000000e+00> : vector<8x512xf32>
    %10 = vector.multi_reduction <add>, %9, %cst [0] : vector<1x8x512xf32> to vector<8x512xf32>
    %11 = arith.addf %8, %10 : vector<8x512xf32>
    %c0_7 = arith.constant 0 : index
    %c0_8 = arith.constant 0 : index
    %c0_9 = arith.constant 0 : index
    %12 = vector.load %arg4[%c0_7, %c0_8, %c0_9] : memref<1x8x512xf32, #tpu.memory_space<vmem>>, vector<1x8x512xf32>
    %13 = vector.shape_cast %12 : vector<1x8x512xf32> to vector<8x512xf32>
    %14 = vector.shape_cast %11 : vector<8x512xf32> to vector<1x8x512xf32>
    tpu.vector_store %arg4[%c0_7, %c0_8, %c0_9], %14 {strides = array<i32>} : memref<1x8x512xf32, #tpu.memory_space<vmem>>, vector<1x8x512xf32>,
    return
  }
  func.func @transform_0(%arg0: i32, %arg1: i32) -> (i32, i32) {
    %c1_i32 = arith.constant 1 : i32
    %0 = arith.muli %arg0, %c1_i32 : i32
    %1 = arith.addi %0, %arg1 : i32
    %c0_i32 = arith.constant 0 : i32
    %c0_i32_0 = arith.constant 0 : i32
    return %1, %c0_i32 : i32, i32
  }
  func.func @transform_1(%arg0: i32, %arg1: i32) -> (i32, i32) {
    %c1_i32 = arith.constant 1 : i32
    %0 = arith.muli %arg0, %c1_i32 : i32
    %1 = arith.addi %0, %arg1 : i32
    %c0_i32 = arith.constant 0 : i32
    %c0_i32_0 = arith.constant 0 : i32
    return %1, %c0_i32 : i32, i32
  }
  func.func @transform_2(%arg0: i32, %arg1: i32) -> (i32, i32, i32) {
    %c0_i32 = arith.constant 0 : i32
    %c0_i32_0 = arith.constant 0 : i32
    %c0_i32_1 = arith.constant 0 : i32
    return %arg0, %c0_i32, %c0_i32_0 : i32, i32, i32
  }
}

</mosaic_0001>

<bundles_post_ra>
// kernel: points_mse_loss.1
= control target key start
LH: loop header
LB: loop body
LE: loop exit
PB: predicated region body
PF: predicated region fallthrough
CT: control target
= control target key end

     0   :  { %s385_s9 = smov 0   ;;  %s387_s10 = smov 0   ;;  %s421_s0 = inlined_call_operand.vmem [shape: f32[16,512], index: 0, kind: input, shape index: {}]   ;;  %s422_s1 = inlined_call_operand.vmem [shape: f32[16,512], index: 1, kind: input, shape index: {}]   ;;  %s423_s2 = inlined_call_operand.vmem [shape: f32[2,8,512], index: 2, kind: output, shape index: {}]  }
   0x1   :  { %s389_s11 = smov 0  }
   0x2 LB: > { %s24_s12 = sadd.s32 1, %s364_s10  ;;  %p309_p0 = scmp.ge.s32.totalorder %s368_s11, 1  ;;  %s368_s11 = sphi %s389_s11, %s12_s11   ;;  %s364_s10 = sphi %s387_s10, %s425_s10   ;;  %s360_s9 = sphi %s385_s9, %s424_s9  }
   0x3   : > { %p26_p1 = scmp.ge.s32.totalorder %s24_s12, 2  ;;  %p142_p2 = scmp.lt.s32.totalorder %s368_s11, 3 }
   0x5   : > { %s427_s12 = smov (%p26_p1, %s24_s12), 0  ;;  %p143_p3 = pnand %p309_p0, %p142_p2 }
   0x6   : > { %p172_p4 = scmp.lt.s32.totalorder (!%p143_p3), %s360_s9, 1 }
   0x7   : > { %146 = sbr.rel (%p143_p3) target bundleno = 26 (0x1a), region = 28 }
   0xe   : > { %s429_s9 = smov (!%p172_p4, %s360_s9), 1 }
   0xf   : > { %s318_s13 = sshll.u32 %s429_s9, 5 }
  0x10   : > { %s176_s16 = scalar_lea.vmem %s421_s0, %s318_s13  ;;  %s183_s19 = scalar_lea.vmem %s422_s1, %s318_s13 }
  0x11   : > { %v198_v0 = vld [vmem:[%s176_s16] sm:$0xff]  ;;  %v199_v1 = vld [vmem:[%s176_s16 + $0x8] sm:$0xff]  ;;  %v200_v2 = vld [vmem:[%s176_s16 + $0x10] sm:$0xff]  ;;  %s189_s22 = scalar_lea.vmem %s423_s2, %s318_s13 }
  0x12   : > { %v202_v3 = vld [vmem:[%s183_s19] sm:$0xff]  ;;  %v203_v4 = vld [vmem:[%s183_s19 + $0x8] sm:$0xff]  ;;  %v204_v5 = vld [vmem:[%s183_s19 + $0x10] sm:$0xff] }
  0x13   : > { %v206_v6 = vsub.f32 %v198_v0, %v202_v3  ;;  %v207_v7 = vsub.f32 %v199_v1, %v203_v4  ;;  %v208_v8 = vsub.f32 %v200_v2, %v204_v5  ;;  %v201_v9 = vld [vmem:[%s176_s16 + $0x18] sm:$0xff] }
  0x14   : > { %v205_v10 = vld [vmem:[%s183_s19 + $0x18] sm:$0xff] }
  0x15   : > { %v209_v11 = vsub.f32 %v201_v9, %v205_v10  ;;  %v210_v12 = vmul.f32 %v206_v6, %v206_v6  ;;  %v211_v13 = vmul.f32 %v207_v7, %v207_v7  ;;  %v212_v14 = vmul.f32 %v208_v8, %v208_v8 }
  0x17   : > { %v213_v15 = vmul.f32 %v209_v11, %v209_v11  ;;  %226 = vst [vmem:[%s189_s22] sm:$0xff] %v210_v12  ;;  %227 = vst [vmem:[%s189_s22 + $0x8] sm:$0xff] %v211_v13 }
  0x18   : > { %228 = vst [vmem:[%s189_s22 + $0x10] sm:$0xff] %v212_v14 }
  0x19   : > { %229 = vst [vmem:[%s189_s22 + $0x18] sm:$0xff] %v213_v15 }
  0x1a PF: > { %s12_s11 = sadd.s32 1, %s368_s11   ;;  %s424_s9 = smov %s364_s10 }
  0x1b   : > { %p9_p5 = scmp.ge.s32.totalorder %s12_s11, 4   ;;  %s425_s10 = smov %s427_s12 }
  0x1d   :  { %11 = sbr.rel (!%p9_p5) target bundleno = 2 (0x2), region = 65 }

</bundles_post_ra>
